<compile_context>
chip_gen: v7x
topology: tpu7x:2x2x1
jax: 0.10.0
libtpu: 0.0.40
codegen_flags: <defaults>
</compile_context>

<pallas_src>
import functools
import math

import jax
import jax.numpy as jnp
from jax.experimental import pallas as pl
from jax.experimental.pallas import tpu as pltpu

MARGIN = 0.2
SCALE = 8.0

_ROW_ALIGN = 32         # covers sublane tiling for f32 (8), bf16 (16), int8/fp8 (32)
_MAX_PACKED_WIDTH = 512  # cap on D*pack so the segment matrix stays tiny


def _round_up(x: int, m: int) -> int:
    return ((x + m - 1) // m) * m


def _entail_packed_kernel(p_ref, c_ref, o_ref, *, d, pack):
    # p_ref, c_ref: (tm, d*pack) tiles; each packed row holds `pack`
    # independent logical rows of length d laid out contiguously along lanes.
    # o_ref: (tm, pack) lane-dense output slab.
    width = d * pack
    prod = p_ref[...].astype(jnp.float32) * c_ref[...].astype(jnp.float32)
    # Block-diagonal (width, pack) averaging matrix: lane l contributes 1/d to
    # segment c iff c*d <= l < (c+1)*d (comparison form, no integer divide).
    # Segmented mean via one tiny MXU matmul keeps everything in the natural
    # (sublane, lane) layout -- no lane reshapes / relayouts.
    lane = jax.lax.broadcasted_iota(jnp.int32, (width, pack), 0)
    col = jax.lax.broadcasted_iota(jnp.int32, (width, pack), 1)
    lo = col * d
    seg = jnp.where((lane >= lo) & (lane < lo + d), 1.0 / d, 0.0)
    seg = seg.astype(jnp.float32)
    m = jnp.dot(prod, seg, preferred_element_type=jnp.float32,
                precision=jax.lax.Precision.HIGHEST) - MARGIN
    o_ref[...] = (jnp.clip(m, -1.0, 1.0) * SCALE).astype(o_ref.dtype)


def _entail_kernel(p_ref, c_ref, o_ref):
    # p_ref, c_ref: (tm, D) tiles; o_ref: (tm, 1).  Output traffic is 1/D of
    # the input traffic, so the narrow (masked) store column is negligible.
    prod = p_ref[...].astype(jnp.float32) * c_ref[...].astype(jnp.float32)
    m = jnp.mean(prod, axis=-1, keepdims=True) - MARGIN  # margin hoisted out
    o_ref[...] = (jnp.clip(m, -1.0, 1.0) * SCALE).astype(o_ref.dtype)


def plane_entailment(premise: jax.Array, consequence: jax.Array) -> jax.Array:
    assert premise.shape == consequence.shape
    *lead, D = premise.shape
    R = int(math.prod(lead)) if lead else 1

    # Keep native dtype end-to-end (bf16 stays bf16 in HBM); f32 math in-kernel.
    dt = jnp.promote_types(premise.dtype, consequence.dtype)
    p2 = premise.reshape(R, D).astype(dt)
    c2 = consequence.reshape(R, D).astype(dt)

    # Lane-packing: smallest pack such that D*pack is a multiple of 128.
    pack = 128 // math.gcd(D, 128)
    if pack < 2 or D * pack > _MAX_PACKED_WIDTH:
        pack = 1
    width = D * pack
    Rp = pl.cdiv(R, pack)  # rows in the packed view

    # Row-tile selection: ~4 MiB per input DMA block; 2 inputs x 2 pipeline
    # buffers stay within a VMEM budget that is safe on every generation
    # (v7x: 64 MiB physical / 32 MiB scoped).
    itemsize = jnp.dtype(dt).itemsize
    target_block_bytes = 4 << 20
    vmem_budget = 24 << 20  # for the double-buffered input blocks
    tm = target_block_bytes // (width * itemsize)
    tm = min(tm, vmem_budget // (4 * width * itemsize))
    tm = max(_ROW_ALIGN, (tm // _ROW_ALIGN) * _ROW_ALIGN)
    rp_ceil = _round_up(Rp, _ROW_ALIGN)
    tm = min(tm, rp_ceil)
    # Keep >= 2 grid steps when there is enough work (v7x has 2 TensorCores).
    if pl.cdiv(rp_ceil, tm) < 2 and rp_ceil >= 2 * _ROW_ALIGN:
        tm = _round_up(rp_ceil // 2, _ROW_ALIGN)

    grid_n = pl.cdiv(Rp, tm)
    rp_pad = grid_n * tm
    r_pad = rp_pad * pack

    if r_pad != R:  # pad awkward R instead of shrinking the tile
        p2 = jnp.pad(p2, ((0, r_pad - R), (0, 0)))
        c2 = jnp.pad(c2, ((0, r_pad - R), (0, 0)))

    pv = p2.reshape(rp_pad, width)   # free row-major reshape
    cv = c2.reshape(rp_pad, width)

    if pack > 1:
        kernel = functools.partial(_entail_packed_kernel, d=D, pack=pack)
        out_w = pack
    else:
        kernel = _entail_kernel
        out_w = 1

    out = pl.pallas_call(
        kernel,
        out_shape=jax.ShapeDtypeStruct((rp_pad, out_w), dt),
        grid_spec=pltpu.PrefetchScalarGridSpec(
            num_scalar_prefetch=0,
            grid=(grid_n,),
            in_specs=[
                pl.BlockSpec((tm, width), lambda i: (i, 0)),
                pl.BlockSpec((tm, width), lambda i: (i, 0)),
            ],
            out_specs=pl.BlockSpec((tm, out_w), lambda i: (i, 0)),
        ),
        compiler_params=pltpu.CompilerParams(
            dimension_semantics=("parallel",),
            vmem_limit_bytes=32 * 1024 * 1024,
        ),
    )(pv, cv)

    # Packed output (rp_pad, pack) flattens row-major back to logical order.
    out_flat = out.reshape(rp_pad * out_w)[:R]
    return out_flat.reshape(tuple(lead))


def _reference(premise, consequence):
    p = premise.astype(jnp.float32)
    c = consequence.astype(jnp.float32)
    return jnp.clip(jnp.mean(p * c - MARGIN, axis=-1), -1.0, 1.0) * SCALE


if __name__ == "__main__":
    key = jax.random.PRNGKey(0)
    k1, k2, k3, k4 = jax.random.split(key, 4)

    # Case 1: packed-D path (D=32 -> 4 logical rows per 128-lane row), f32.
    p1 = jax.random.normal(k1, (2, 8, 32), dtype=jnp.float32)
    c1 = jax.random.normal(k2, (2, 8, 32), dtype=jnp.float32)
    o1 = plane_entailment(p1, c1)
    jax.block_until_ready(o1)
    r1 = _reference(p1, c1)
    assert o1.shape == r1.shape, (o1.shape, r1.shape)
    assert jnp.allclose(o1, r1, atol=1e-4, rtol=1e-4), "mismatch (packed path)"

    # Case 2: plain lane-reduction path (D=160 packs too wide -> pack=1), f32.
    p2 = jax.random.normal(k3, (2, 8, 160), dtype=jnp.float32)
    c2 = jax.random.normal(k4, (2, 8, 160), dtype=jnp.float32)
    o2 = plane_entailment(p2, c2)
    jax.block_until_ready(o2)
    r2 = _reference(p2, c2)
    assert o2.shape == r2.shape, (o2.shape, r2.shape)
    assert jnp.allclose(o2, r2, atol=1e-4, rtol=1e-4), "mismatch (plain path)"

    # Case 3: bf16 inputs stay bf16 in HBM; f32 math in-kernel, bf16 output.
    p3 = p1.astype(jnp.bfloat16)
    c3 = c1.astype(jnp.bfloat16)
    o3 = plane_entailment(p3, c3)
    jax.block_until_ready(o3)
    r3 = _reference(p3, c3)
    assert o3.dtype == jnp.bfloat16
    assert jnp.allclose(o3.astype(jnp.float32), r3, atol=5e-2, rtol=5e-2), \
        "mismatch (bf16 path)"

    print("KERNEL_OK")
</pallas_src>

<mosaic_0001>
module attributes {stable_mosaic.version = 11 : i64} {
  func.func @_entail_packed_kernel(%arg0: i32, %arg1: memref<32x128xf32, #tpu.memory_space<vmem>>, %arg2: memref<32x128xf32, #tpu.memory_space<vmem>>, %arg3: memref<32x4xf32, #tpu.memory_space<vmem>>) attributes {dimension_semantics = [#tpu.dimension_semantics<parallel>], iteration_bounds = array<i64: 1>, scalar_prefetch = 0 : i64, scratch_operands = 0 : i64, tpu.core_type = #tpu.core_type<tc>, window_params = [{transform_indices = @transform_0, window_bounds = array<i64: 32, 128>}, {transform_indices = @transform_1, window_bounds = array<i64: 32, 128>}, {transform_indices = @transform_2, window_bounds = array<i64: 32, 4>}]} {
    %c0 = arith.constant 0 : index
    %c0_0 = arith.constant 0 : index
    %0 = vector.load %arg1[%c0, %c0_0] : memref<32x128xf32, #tpu.memory_space<vmem>>, vector<32x128xf32>
    %c0_1 = arith.constant 0 : index
    %c0_2 = arith.constant 0 : index
    %1 = vector.load %arg2[%c0_1, %c0_2] : memref<32x128xf32, #tpu.memory_space<vmem>>, vector<32x128xf32>
    %2 = arith.mulf %0, %1 : vector<32x128xf32>
    %3 = tpu.iota {dimensions = array<i32: 0>} : vector<128x4xi32>
    %4 = tpu.iota {dimensions = array<i32: 1>} : vector<128x4xi32>
    %c32_i32 = arith.constant 32 : i32
    %5 = vector.broadcast %c32_i32 : i32 to vector<128x4xi32>
    %6 = arith.muli %4, %5 : vector<128x4xi32>
    %7 = arith.cmpi sge, %3, %6 : vector<128x4xi32>
    %c32_i32_3 = arith.constant 32 : i32
    %8 = vector.broadcast %c32_i32_3 : i32 to vector<128x4xi32>
    %9 = arith.addi %6, %8 : vector<128x4xi32>
    %10 = arith.cmpi slt, %3, %9 : vector<128x4xi32>
    %11 = arith.andi %7, %10 : vector<128x4xi1>
    %cst = arith.constant 3.125000e-02 : f32
    %cst_4 = arith.constant 0.000000e+00 : f32
    %12 = vector.broadcast %cst : f32 to vector<128x4xf32>
    %13 = vector.broadcast %cst_4 : f32 to vector<128x4xf32>
    %14 = arith.select %11, %12, %13 : vector<128x4xi1>, vector<128x4xf32>
    %cst_5 = arith.constant dense<0.000000e+00> : vector<32x4xf32>
    %15 = tpu.matmul %2, %14, %cst_5 {dimension_numbers = #tpu.dot_dimension_numbers<[1], [0], [0], [1], [0, 0, 1, 1], [], []>, precision = #tpu.contract_precision<fp32>} : vector<32x128xf32>, vector<128x4xf32>, vector<32x4xf32> -> vector<32x4xf32>
    %cst_6 = arith.constant 2.000000e-01 : f32
    %16 = vector.broadcast %cst_6 : f32 to vector<32x4xf32>
    %17 = arith.subf %15, %16 : vector<32x4xf32>
    %cst_7 = arith.constant -1.000000e+00 : f32
    %cst_8 = arith.constant 1.000000e+00 : f32
    %18 = vector.broadcast %cst_7 : f32 to vector<32x4xf32>
    %19 = arith.maximumf %18, %17 : vector<32x4xf32>
    %20 = vector.broadcast %cst_8 : f32 to vector<32x4xf32>
    %21 = arith.minimumf %20, %19 : vector<32x4xf32>
    %cst_9 = arith.constant 8.000000e+00 : f32
    %22 = vector.broadcast %cst_9 : f32 to vector<32x4xf32>
    %23 = arith.mulf %21, %22 : vector<32x4xf32>
    %c0_10 = arith.constant 0 : index
    %c0_11 = arith.constant 0 : index
    %24 = vector.load %arg3[%c0_10, %c0_11] : memref<32x4xf32, #tpu.memory_space<vmem>>, vector<32x4xf32>
    tpu.vector_store %arg3[%c0_10, %c0_11], %23 {strides = array<i32>} : memref<32x4xf32, #tpu.memory_space<vmem>>, vector<32x4xf32>,
    return
  }
  func.func @transform_0(%arg0: i32) -> (i32, i32) {
    %c0_i32 = arith.constant 0 : i32
    %c0_i32_0 = arith.constant 0 : i32
    return %arg0, %c0_i32 : i32, i32
  }
  func.func @transform_1(%arg0: i32) -> (i32, i32) {
    %c0_i32 = arith.constant 0 : i32
    %c0_i32_0 = arith.constant 0 : i32
    return %arg0, %c0_i32 : i32, i32
  }
  func.func @transform_2(%arg0: i32) -> (i32, i32) {
    %c0_i32 = arith.constant 0 : i32
    %c0_i32_0 = arith.constant 0 : i32
    return %arg0, %c0_i32 : i32, i32
  }
}

</mosaic_0001>

<bundles_post_ra>
// kernel: tpu_custom_call.1
= control target key start
LH: loop header
LB: loop body
LE: loop exit
PB: predicated region body
PF: predicated region fallthrough
CT: control target
= control target key end

     0   :  { %7 = vsyncpa [#allocation3], 0  ;;  %s2100_s0 = inlined_call_operand.hbm [shape: f32[32,128], index: 0, kind: input, shape index: {}]   ;;  %s2101_s1 = inlined_call_operand.hbm [shape: f32[32,128], index: 1, kind: input, shape index: {}]   ;;  %s2102_s2 = inlined_call_operand.vmem [shape: f32[32,4], index: 2, kind: output, shape index: {}]  }
   0x1   :  { %8 = vsyncpa [#allocation5], 0  ;;  %s1507_s9 = smov [#allocation2]   ;;  %s1459_s13 = scalar_lea.hbm %s2100_s0, 512 }
   0x2   :  { %s14_s10 = sshll.u32 %s1507_s9, 4  ;;  %p1460_p0 = scmp.ne.s32.totalorder %s2100_s0, %s1459_s13  ;;  %s15_s10 = int_to_ptr.vmem [resolvable:$true] %s14_s10 }
   0x3   :  { %p1463_p1 = scmp.lt.u32.totalorder %s1459_s13, %s2100_s0 }
   0x5   :  { %p1465_p2 = pnand %p1463_p1, %p1460_p0 }
   0x7   :  { %1468 = shalt.err (!%p1465_p2)
}
   0x8   :  { %s1469_s18 = scalar_lea.vmem %s15_s10, 512  ;;  %p1474_p4 = scmp.lt.s32.totalorder %s15_s10, %s15_s10 }
   0x9   :  { %p1470_p3 = scmp.ne.s32.totalorder %s15_s10, %s1469_s18  ;;  %p1475_p5 = scmp.lt.s32.totalorder %s1469_s18, %s1469_s18 }
   0xb   :  { %p1476_p6 = por %p1475_p5, %p1474_p4 }
   0xd   :  { %p1477_p7 = pnand %p1476_p6, %p1470_p3 }
   0xf   :  { %1480 = shalt.err (!%p1477_p7)
}
  0x10   :  { %s1508_s19 = smov 128   ;;  %s1509_s20 = smov 8  }
  0x11   :  { %20 = dma.hbm_to_vmem [thread:$0]  %s2100_s0, 512, %s15_s10, [#allocation3], %s1508_s19, %s1508_s19, %s1509_s20  }
  0x12   :  { %s1510_s23 = smov [#allocation4]   ;;  %s1481_s27 = scalar_lea.hbm %s2101_s1, 512 }
  0x13   :  { %s26_s24 = sshll.u32 %s1510_s23, 4  ;;  %p1482_p8 = scmp.ne.s32.totalorder %s2101_s1, %s1481_s27  ;;  %s27_s24 = int_to_ptr.vmem [resolvable:$true] %s26_s24 }
  0x14   :  { %p1485_p9 = scmp.lt.u32.totalorder %s1481_s27, %s2101_s1 }
  0x16   :  { %p1487_p10 = pnand %p1485_p9, %p1482_p8 }
  0x18   :  { %1490 = shalt.err (!%p1487_p10)
}
  0x19   :  { %s1491_s4 = scalar_lea.vmem %s27_s24, 512  ;;  %p1496_p12 = scmp.lt.s32.totalorder %s27_s24, %s27_s24 }
  0x1a   :  { %p1492_p11 = scmp.ne.s32.totalorder %s27_s24, %s1491_s4  ;;  %p1497_p13 = scmp.lt.s32.totalorder %s1491_s4, %s1491_s4 }
  0x1c   :  { %p1498_p0 = por %p1497_p13, %p1496_p12 }
  0x1e   :  { %p1499_p1 = pnand %p1498_p0, %p1492_p11 }
  0x20   :  { %1502 = shalt.err (!%p1499_p1)
}
  0x21   :  { %32 = dma.hbm_to_vmem [thread:$0]  %s2101_s1, 512, %s27_s24, [#allocation5], %s1508_s19, %s1508_s19, %s1509_s20  }
  0x22   :  { %1503 = dma.done.wait [#allocation3], 512  }
  0x23   :  { %1504 = vsyncadd [#allocation3], 4294966784  ;;  %v51_v0 = vlaneseq }
  0x24   :  { %1505 = dma.done.wait [#allocation5], 512  }
  0x25   :  { %1506 = vsyncadd [#allocation5], 4294966784  ;;  %v1552_v1 = vshrl.u32 %v51_v0, 7  ;;  %v69_v2 = vand.u32 127, %v51_v0  ;;  %v2116_v12 = vmov 0  ;;  %v2122_v18 = vmov 0 }
  0x26   :  { %v1511_v14 = vmov 0.03125|0.03125   ;;  %v39_v24 = vld [vmem:[#allocation2] sm:$0xff]  ;;  %v1512_v26 = vmov 0.0   ;;  %v2128_v29 = vmov 0  ;;  %v40_v32 = vld [vmem:[#allocation2 + $0x8] sm:$0xff] }
  0x27   :  { %v53_v3 = vadd.s32 8, %v1552_v1  ;;  %v1555_v4 = vmul.u32 32, %v69_v2  ;;  %v54_v5 = vadd.s32 16, %v1552_v1  ;;  %v55_v7 = vadd.s32 24, %v1552_v1  ;;  %v43_v25 = vld [vmem:[#allocation4] sm:$0xff]  ;;  %v44_v33 = vld [vmem:[#allocation4 + $0x8] sm:$0xff] }
  0x28   :  { %v56_v8 = vadd.s32 32, %v1552_v1  ;;  %v57_v10 = vadd.s32 40, %v1552_v1  ;;  %v58_v13 = vadd.s32 48, %v1552_v1  ;;  %v59_v16 = vadd.s32 56, %v1552_v1 }
  0x29   :  { %vm71_vm0 = vcmp.ge.s32.totalorder %v1552_v1, %v1555_v4  ;;  %v1561_v6 = vadd.s32 32, %v1555_v4  ;;  %vm72_vm1 = vcmp.ge.s32.totalorder %v53_v3, %v1555_v4  ;;  %vm73_vm5 = vcmp.ge.s32.totalorder %v54_v5, %v1555_v4 }
  0x2a   :  { %vm74_vm8 = vcmp.ge.s32.totalorder %v55_v7, %v1555_v4  ;;  %vm75_vm12 = vcmp.ge.s32.totalorder %v56_v8, %v1555_v4  ;;  %vm76_vm15 = vcmp.ge.s32.totalorder %v57_v10, %v1555_v4  ;;  %v60_v19 = vadd.s32 64, %v1552_v1 }
  0x2b   :  { %vm88_vm2 = vcmp.lt.s32.totalorder %v1552_v1, %v1561_v6  ;;  %vm89_vm3 = vcmp.lt.s32.totalorder %v53_v3, %v1561_v6  ;;  %vm90_vm6 = vcmp.lt.s32.totalorder %v54_v5, %v1561_v6  ;;  %vm91_vm9 = vcmp.lt.s32.totalorder %v55_v7, %v1561_v6 }
  0x2c   :  { %vm1569_vm4 = vmand %vm71_vm0, %vm88_vm2  ;;  %vm92_vm13 = vcmp.lt.s32.totalorder %v56_v8, %v1561_v6  ;;  %vm93_vm0 = vcmp.lt.s32.totalorder %v57_v10, %v1561_v6  ;;  %v61_v20 = vadd.s32 72, %v1552_v1  ;;  %v62_v23 = vadd.s32 80, %v1552_v1 }
  0x2d   :  { %vm1576_vm7 = vmand %vm72_vm1, %vm89_vm3  ;;  %vm77_vm3 = vcmp.ge.s32.totalorder %v58_v13, %v1555_v4  ;;  %v120_v27 = vsel %vm1569_vm4, 0.03125, %v1512_v26  ;;  %v63_v31 = vadd.s32 88, %v1552_v1  ;;  %v64_v36 = vadd.s32 96, %v1552_v1 }
  0x2e   :  { %vm1586_vm10 = vmpackc.low %vm1576_vm7, %vm1569_vm4  ;;  %v121_v28 = vsel %vm1576_vm7, 0.03125, %v1512_v26  ;;  %vm79_vm7 = vcmp.ge.s32.totalorder %v60_v19, %v1555_v4  ;;  %v47_v37 = vmul.f32 %v43_v25, %v39_v24  ;;  %v1696_v38 = vsub.f32 %v120_v27, %v120_v27 }
  0x2f   :  { %v2117_v12 = vsel %vm1586_vm10, 4294967295, %v2116_v12  ;;  %1242 = vmatprep.subr.msk.bf16.mxu1 %vm1586_vm10, %v1511_v14  ;;  %1338 = vmatprep.subr.msk.bf16.mxu0 %vm1586_vm10, %v1511_v14  ;;  %vm1597_vm11 = vmand %vm73_vm5, %vm90_vm6  ;;  %vm94_vm5 = vcmp.lt.s32.totalorder %v58_v13, %v1561_v6  ;;  %v1698_v39 = vsub.f32 %v121_v28, %v121_v28  ;;  %v2134_v40 = vmov 0 }
  0x30   :  { %1244 = vmatpush3.bf16.msk.msra.mxu1 %vm1586_vm10, %v1511_v14  ;;  %1340 = vmatpush3.bf16.msk.msra.mxu0 %vm1586_vm10, %v1511_v14  ;;  %vm1610_vm14 = vmand %vm74_vm8, %vm91_vm9  ;;  %vm78_vm8 = vcmp.ge.s32.totalorder %v59_v16, %v1555_v4  ;;  %vm95_vm9 = vcmp.lt.s32.totalorder %v59_v16, %v1561_v6  ;;  %v122_v34 = vsel %vm1597_vm11, 0.03125, %v1512_v26  ;;  %v65_v42 = vadd.s32 104, %v1552_v1 }
  0x31   :  { %vm1620_vm1 = vmpackc.low %vm1610_vm14, %vm1597_vm11  ;;  %v1725_v43 = vand.u32 4294901760, %v47_v37  ;;  %v48_v44 = vmul.f32 %v44_v33, %v40_v32  ;;  %v123_v45 = vsel %vm1610_vm14, 0.03125, %v1512_v26  ;;  %v1730_v46 = vsub.f32 %v122_v34, %v122_v34 }
  0x32   :  { %v2123_v18 = vsel %vm1620_vm1, 4294967295, %v2122_v18  ;;  %1246 = vmatprep.subr.msk.bf16.mxu1 %vm1620_vm1, %v1511_v14  ;;  %1342 = vmatprep.subr.msk.bf16.mxu0 %vm1620_vm1, %v1511_v14  ;;  %vm1632_vm2 = vmand %vm75_vm12, %vm92_vm13  ;;  %vm80_vm13 = vcmp.ge.s32.totalorder %v61_v20, %v1555_v4  ;;  %v66_v53 = vadd.s32 112, %v1552_v1  ;;  %v67_v54 = vadd.s32 120, %v1552_v1 }
  0x33   :  { %vm1638_vm6 = vmand %vm76_vm15, %vm93_vm0  ;;  %vm96_vm15 = vcmp.lt.s32.totalorder %v60_v19, %v1561_v6  ;;  %v124_v48 = vsel %vm1632_vm2, 0.03125, %v1512_v26  ;;  %v1762_v50 = vsub.f32 %v47_v37, %v1725_v43  ;;  %v1777_v55 = vand.u32 4294901760, %v48_v44  ;;  %v45_v37 = vld [vmem:[#allocation4 + $0x10] sm:$0xff] }
  0x34   :  { %1248 = vmatpush3.bf16.msk.msra.mxu1 %vm1620_vm1, %v1511_v14  ;;  %1344 = vmatpush3.bf16.msk.msra.mxu0 %vm1620_vm1, %v1511_v14  ;;  %vm1661_vm12 = vmpackc.low %vm1638_vm6, %vm1632_vm2  ;;  %v125_v51 = vsel %vm1638_vm6, 0.03125, %v1512_v26  ;;  %vm2142_vm2 = vcmp.ge.s32.totalorder %v62_v23, %v1555_v4  ;;  %v1779_v56 = vsub.f32 %v123_v45, %v123_v45  ;;  %vm2145_vm6 = vcmp.ge.s32.totalorder %v63_v31, %v1555_v4 }
  0x35   :  { %v2129_v29 = vsel %vm1661_vm12, 4294967295, %v2128_v29  ;;  %1250 = vmatprep.subr.msk.bf16.mxu1 %vm1661_vm12, %v1511_v14  ;;  %1346 = vmatprep.subr.msk.bf16.mxu0 %vm1661_vm12, %v1511_v14  ;;  %vm1675_vm4 = vmand %vm77_vm3, %vm94_vm5  ;;  %vm97_vm3 = vcmp.lt.s32.totalorder %v61_v20, %v1561_v6  ;;  %v2146_v57 = vmov 0  ;;  %v203_v58 = vand.u32 4294901760, %v1762_v50 }
  0x36   :  { %vm1690_vm0 = vmand %vm78_vm8, %vm95_vm9  ;;  %vm98_vm9 = vcmp.lt.s32.totalorder %v62_v23, %v1561_v6  ;;  %v243_v60 = vand.u32 4294901760, %v1696_v38  ;;  %v249_v61 = vand.u32 4294901760, %v1698_v39  ;;  %v1812_v62 = vsub.f32 %v124_v48, %v124_v48 }
  0x37   :  { %vm1704_vm11 = vmpackc.low %vm1690_vm0, %vm1675_vm4  ;;  %v1814_v63 = vsub.f32 %v125_v51, %v125_v51  ;;  %v204_v1 = vsub.f32 %v1762_v50, %v203_v58  ;;  %1159 = vmatprep.mubr.f32.mxu0 %v203_v58  ;;  %vm85_vm1 = vcmp.ge.s32.totalorder %v66_v53, %v1555_v4  ;;  %vm86_vm10 = vcmp.ge.s32.totalorder %v67_v54, %v1555_v4 }
  0x38   :  { %v2135_v40 = vsel %vm1704_vm11, 4294967295, %v2134_v40  ;;  %1252 = vmatpush3.bf16.msk.msra.mxu1 %vm1661_vm12, %v1511_v14  ;;  %1348 = vmatpush3.bf16.msk.msra.mxu0 %vm1661_vm12, %v1511_v14  ;;  %vm1719_vm8 = vmand %vm79_vm7, %vm96_vm15  ;;  %vm99_vm15 = vcmp.lt.s32.totalorder %v63_v31, %v1561_v6  ;;  %v1833_v3 = vsub.f32 %v48_v44, %v1777_v55  ;;  %v255_v7 = vand.u32 4294901760, %v1730_v46 }
  0x39   :  { %1254 = vmatprep.subr.msk.bf16.mxu1 %vm1704_vm11, %v1511_v14  ;;  %1350 = vmatprep.subr.msk.bf16.mxu0 %vm1704_vm11, %v1511_v14  ;;  %vm1742_vm7 = vmand %vm80_vm13, %vm97_vm3  ;;  %vm100_vm3 = vcmp.lt.s32.totalorder %v64_v36, %v1561_v6  ;;  %vm101_vm13 = vcmp.lt.s32.totalorder %v65_v42, %v1561_v6  ;;  %v205_v5 = vand.u32 4294901760, %v204_v1  ;;  %v261_v8 = vand.u32 4294901760, %v1779_v56 }
  0x3a   :  { %vm1755_vm5 = vmpackc.low %vm1742_vm7, %vm1719_vm8  ;;  %v126_v9 = vsel %vm1675_vm4, 0.03125, %v1512_v26  ;;  %v244_v11 = vsub.f32 %v1696_v38, %v243_v60  ;;  %v250_v13 = vsub.f32 %v1698_v39, %v249_v61  ;;  %v127_v15 = vsel %vm1690_vm0, 0.03125, %v1512_v26 }
  0x3b   :  { %vm1771_vm14 = vmand %vm2142_vm2, %vm98_vm9  ;;  %vm84_vm2 = vcmp.ge.s32.totalorder %v65_v42, %v1555_v4  ;;  %1045 = vmatprep.mubr.f32.mxu1 %v205_v5  ;;  %v213_v19 = vand.u32 4294901760, %v1833_v3  ;;  %v267_v20 = vand.u32 4294901760, %v1812_v62  ;;  %v1882_v21 = vsub.f32 %v126_v9, %v126_v9 }
  0x3c   :  { %1256 = vmatpush3.bf16.msk.msra.mxu1 %vm1704_vm11, %v1511_v14  ;;  %1352 = vmatpush3.bf16.msk.msra.mxu0 %vm1704_vm11, %v1511_v14  ;;  %vm1789_vm9 = vmand %vm2145_vm6, %vm99_vm15  ;;  %vm2150_vm6 = vcmp.ge.s32.totalorder %v64_v36, %v1555_v4  ;;  %v256_v4 = vsub.f32 %v1730_v46, %v255_v7  ;;  %v273_v22 = vand.u32 4294901760, %v1814_v63  ;;  %v1893_v23 = vsub.f32 %v127_v15, %v127_v15  ;;  %v41_v36 = vld [vmem:[#allocation2 + $0x10] sm:$0xff] }
  0x3d   :  { %v2147_v57 = vsel %vm1789_vm9, 4294967295, %v2146_v57  ;;  %1258 = vmatprep.subr.msk.bf16.mxu1 %vm1755_vm5, %v1511_v14  ;;  %1354 = vmatprep.subr.msk.bf16.mxu0 %vm1755_vm5, %v1511_v14  ;;  %vm1806_vm15 = vmpackc.low %vm1789_vm9, %vm1771_vm14  ;;  %vm102_vm9 = vcmp.lt.s32.totalorder %v66_v53, %v1561_v6  ;;  %v128_v24 = vsel %vm1719_vm8, 0.03125, %v1512_v26  ;;  %v245_v25 = vand.u32 4294901760, %v244_v11 }
  0x3e   :  { %vm1820_vm11 = vmand %vm2150_vm6, %vm100_vm3  ;;  %v251_v27 = vand.u32 4294901760, %v250_v13  ;;  %v129_v28 = vsel %vm1742_vm7, 0.03125, %v1512_v26  ;;  %v1369_v31 = vpack.c.bf16 %v249_v61, %v243_v60  ;;  %v130_v32 = vsel %vm1771_vm14, 0.03125, %v1512_v26  ;;  %v42_v60 = vld [vmem:[#allocation2 + $0x18] sm:$0xff] }
  0x3f   :  { %vm1825_vm12 = vmand %vm84_vm2, %vm101_vm13  ;;  %vm103_vm13 = vcmp.lt.s32.totalorder %v67_v54, %v1561_v6  ;;  %v262_v6 = vsub.f32 %v1779_v56, %v261_v8  ;;  %v214_v34 = vsub.f32 %v1833_v3, %v213_v19  ;;  %v268_v35 = vsub.f32 %v1812_v62, %v267_v20  ;;  %v46_v61 = vld [vmem:[#allocation4 + $0x18] sm:$0xff] }
  0x40   :  { %1260 = vmatpush3.bf16.msk.msra.mxu1 %vm1755_vm5, %v1511_v14  ;;  %1356 = vmatpush3.bf16.msk.msra.mxu0 %vm1755_vm5, %v1511_v14  ;;  %vm1857_vm3 = vmpackc.low %vm1825_vm12, %vm1820_vm11  ;;  %v1925_v41 = vsub.f32 %v128_v24, %v128_v24  ;;  %v257_v42 = vand.u32 4294901760, %v256_v4  ;;  %v274_v45 = vsub.f32 %v1814_v63, %v273_v22  ;;  %v1934_v47 = vsub.f32 %v129_v28, %v129_v28 }
  0x41   :  { %1262 = vmatprep.subr.msk.bf16.mxu1 %vm1806_vm15, %v1511_v14  ;;  %1358 = vmatprep.subr.msk.bf16.mxu0 %vm1806_vm15, %v1511_v14  ;;  %vm1870_vm4 = vmand %vm85_vm1, %vm102_vm9  ;;  %vm2163_vm1 = vnez %v2147_v57  ;;  %v263_v44 = vand.u32 4294901760, %v262_v6  ;;  %v1273_v48 = vpack.c.bf16 %v251_v27, %v245_v25  ;;  %v279_v51 = vand.u32 4294901760, %v1882_v21 }
  0x42   :  { %vm1876_vm2 = vmand %vm86_vm10, %vm103_vm13  ;;  %v131_v33 = vsel %vm2163_vm1, 0.03125, %v1512_v26  ;;  %v285_v52 = vand.u32 4294901760, %v1893_v23  ;;  %v1944_v53 = vsub.f32 %v130_v32, %v130_v32  ;;  %v132_v57 = vsel %vm1820_vm11, 0.03125, %v1512_v26 }
  0x43   :  { %vm1911_vm10 = vmpackc.low %vm1876_vm2, %vm1870_vm4  ;;  %v1946_v54 = vsub.f32 %v131_v33, %v131_v33  ;;  %v49_v58 = vmul.f32 %v45_v37, %v41_v36  ;;  %v133_v1 = vsel %vm1825_vm12, 0.03125, %v1512_v26  ;;  %v215_v5 = vand.u32 4294901760, %v214_v34 }
  0x44   :  { %1264 = vmatpush3.bf16.msk.msra.mxu1 %vm1806_vm15, %v1511_v14  ;;  %1360 = vmatpush3.bf16.msk.msra.mxu0 %vm1806_vm15, %v1511_v14  ;;  %v1373_v9 = vpack.c.bf16 %v261_v8, %v255_v7  ;;  %v269_v11 = vand.u32 4294901760, %v268_v35  ;;  %v1277_v0 = vpack.c.bf16 %v263_v44, %v257_v42  ;;  %v275_v13 = vand.u32 4294901760, %v274_v45 }
  0x45   :  { %1266 = vmatprep.subr.msk.bf16.mxu1 %vm1857_vm3, %v1511_v14  ;;  %1362 = vmatprep.subr.msk.bf16.mxu0 %vm1857_vm3, %v1511_v14  ;;  %v291_v15 = vand.u32 4294901760, %v1925_v41  ;;  %v1961_v4 = vand.u32 4294901760, %v49_v58  ;;  %v280_v2 = vsub.f32 %v1882_v21, %v279_v51  ;;  %v286_v7 = vsub.f32 %v1893_v23, %v285_v52 }
  0x46   :  { %v297_v8 = vand.u32 4294901760, %v1934_v47  ;;  %v50_v6 = vmul.f32 %v46_v61, %v42_v60  ;;  %v1966_v24 = vsub.f32 %v132_v57, %v132_v57  ;;  %v1968_v25 = vsub.f32 %v133_v1, %v133_v1 }
  0x47   :  { %v134_v27 = vsel %vm1870_vm4, 0.03125, %v1512_v26  ;;  %v1974_v28 = vsub.f32 %v49_v58, %v1961_v4  ;;  %v135_v32 = vsel %vm1876_vm2, 0.03125, %v1512_v26  ;;  %v1377_v33 = vpack.c.bf16 %v273_v22, %v267_v20 }
  0x48   :  { %1268 = vmatpush3.bf16.msk.msra.mxu1 %vm1857_vm3, %v1511_v14  ;;  %1364 = vmatpush3.bf16.msk.msra.mxu0 %vm1857_vm3, %v1511_v14  ;;  %v303_v34 = vand.u32 4294901760, %v1944_v53  ;;  %v1982_v35 = vand.u32 4294901760, %v50_v6  ;;  %v1281_v16 = vpack.c.bf16 %v275_v13, %v269_v11  ;;  %v292_v36 = vsub.f32 %v1925_v41, %v291_v15 }
  0x49   :  { %1270 = vmatprep.subr.msk.bf16.mxu1 %vm1911_vm10, %v1511_v14  ;;  %1366 = vmatprep.subr.msk.bf16.mxu0 %vm1911_vm10, %v1511_v14  ;;  %v309_v37 = vand.u32 4294901760, %v1946_v54  ;;  %v223_v42 = vand.u32 4294901760, %v1974_v28  ;;  %v281_v26 = vand.u32 4294901760, %v280_v2  ;;  %v287_v17 = vand.u32 4294901760, %v286_v7 }
  0x4a   :  { %v1989_v20 = vsub.f32 %v50_v6, %v1982_v35  ;;  %v1991_v22 = vsub.f32 %v134_v27, %v134_v27  ;;  %v1994_v44 = vsub.f32 %v135_v32, %v135_v32  ;;  %v1381_v45 = vpack.c.bf16 %v285_v52, %v279_v51 }
  0x4b   :  { %v293_v58 = vand.u32 4294901760, %v292_v36  ;;  %v310_v60 = vsub.f32 %v1946_v54, %v309_v37  ;;  %v315_v61 = vand.u32 4294901760, %v1966_v24  ;;  %v321_v13 = vand.u32 4294901760, %v1968_v25 }
  0x4c   :  { %1272 = vmatpush3.bf16.msk.msra.mxu1 %vm1911_vm10, %v1511_v14  ;;  %1368 = vmatpush3.bf16.msk.msra.mxu0 %vm1911_vm10, %v1511_v14  ;;  %v233_v57 = vand.u32 4294901760, %v1989_v20  ;;  %v327_v32 = vand.u32 4294901760, %v1991_v22  ;;  %v333_v36 = vand.u32 4294901760, %v1994_v44  ;;  %vm2164_vm12 = vnez %v2117_v12 }
  0x4d   :  { %1274 = vmatprep.subr.bf16.mxu1 %v1273_v48  ;;  %1370 = vmatprep.subr.bf16.mxu0 %v1369_v31  ;;  %v311_v2 = vand.u32 4294901760, %v310_v60  ;;  %v316_v7 = vsub.f32 %v1966_v24, %v315_v61  ;;  %v322_v27 = vsub.f32 %v1968_v25, %v321_v13  ;;  %vm2165_vm0 = vnez %v2123_v18 }
  0x4e   :  { %v234_v51 = vsub.f32 %v1989_v20, %v233_v57  ;;  %vm2166_vm11 = vnez %v2129_v29  ;;  %v1317_v12 = vpack.c.bf16 %v1893_v23, %v1882_v21  ;;  %vm2167_vm8 = vnez %v2135_v40 }
  0x4f   :  { %1046 = vmatmul.mubr.f32.vlgmr.msra.gmra.mrb[0].mxu1 %v215_v5  ;;  %1160 = vmatmul.mubr.f32.vlgmr.msra.gmra.mrb[0].mxu0 %v213_v19  ;;  %v298_v19 = vsub.f32 %v1934_v47, %v297_v8  ;;  %v1285_v5 = vpack.c.bf16 %v287_v17, %v281_v26  ;;  %v334_v26 = vsub.f32 %v1994_v44, %v333_v36 }
  0x50   :  { %1276 = vmatpush3.bf16.msra.mxu1 %v1273_v48  ;;  %1372 = vmatpush3.bf16.msra.mxu0 %v1369_v31  ;;  %v224_v31 = vsub.f32 %v1974_v28, %v223_v42  ;;  %v304_v48 = vsub.f32 %v1944_v53, %v303_v34  ;;  %v235_v52 = vand.u32 4294901760, %v234_v51  ;;  %v1321_v18 = vpack.c.bf16 %v1934_v47, %v1925_v41 }
  0x51   :  { %1278 = vmatprep.subr.bf16.mxu1 %v1277_v0  ;;  %1374 = vmatprep.subr.bf16.mxu0 %v1373_v9  ;;  %v299_v11 = vand.u32 4294901760, %v298_v19  ;;  %v1393_v19 = vpack.c.bf16 %v321_v13, %v315_v61  ;;  %v1325_v29 = vpack.c.bf16 %v1946_v54, %v1944_v53  ;;  %v1333_v40 = vpack.c.bf16 %v1994_v44, %v1991_v22 }
  0x52   :  { %1162 = vmatprep.mubr.f32.mxu0 %v223_v42  ;;  %v225_v1 = vand.u32 4294901760, %v224_v31  ;;  %v328_v42 = vsub.f32 %v1991_v22, %v327_v32 }
  0x53   :  { %1163 = vmatmul.mubr.f32.gmra.mrb[2].mxu0 %v233_v57  ;;  %v1289_v6 = vpack.c.bf16 %v299_v11, %v293_v58  ;;  %v1309_v57 = vpack.c.bf16 %v1779_v56, %v1730_v46 }
  0x54   :  { %1280 = vmatpush3.bf16.msra.mxu1 %v1277_v0  ;;  %1376 = vmatpush3.bf16.msra.mxu0 %v1373_v9  ;;  %v1385_v9 = vpack.c.bf16 %v297_v8, %v291_v15  ;;  %v305_v0 = vand.u32 4294901760, %v304_v48  ;;  %v1389_v15 = vpack.c.bf16 %v309_v37, %v303_v34  ;;  %v317_v8 = vand.u32 4294901760, %v316_v7 }
  0x55   :  { %1282 = vmatprep.subr.bf16.mxu1 %v1281_v16  ;;  %1378 = vmatprep.subr.bf16.mxu0 %v1377_v33  ;;  %v329_v31 = vand.u32 4294901760, %v328_v42  ;;  %v335_v48 = vand.u32 4294901760, %v334_v26  ;;  %v1397_v37 = vpack.c.bf16 %v333_v36, %v327_v32 }
  0x56   :  { %1048 = vmatprep.mubr.f32.mxu1 %v225_v1  ;;  %1197 = vmatprep.mubr.f32.mxu0 %v1725_v43 }
  0x57   :  { %1049 = vmatmul.mubr.f32.gmra.mrb[2].mxu1 %v235_v52  ;;  %v1301_v34 = vpack.c.bf16 %v335_v48, %v329_v31 }
  0x58   :  { %1284 = vmatpush3.bf16.msra.mxu1 %v1281_v16  ;;  %1380 = vmatpush3.bf16.msra.mxu0 %v1377_v33  ;;  %v1293_v33 = vpack.c.bf16 %v311_v2, %v305_v0  ;;  %v323_v16 = vand.u32 4294901760, %v322_v27 }
  0x59   :  { %1286 = vmatprep.subr.bf16.mxu1 %v1285_v5  ;;  %1382 = vmatprep.subr.bf16.mxu0 %v1381_v45 }
  0x5a   :  { %1083 = vmatprep.mubr.f32.mxu1 %v1725_v43  ;;  %v1297_v17 = vpack.c.bf16 %v323_v16, %v317_v8 }
  0x5c   :  { %1288 = vmatpush3.bf16.msra.mxu1 %v1285_v5  ;;  %1384 = vmatpush3.bf16.msra.mxu0 %v1381_v45  ;;  %v1305_v45 = vpack.c.bf16 %v1698_v39, %v1696_v38  ;;  %v1313_v38 = vpack.c.bf16 %v1814_v63, %v1812_v62  ;;  %v1329_v39 = vpack.c.bf16 %v1968_v25, %v1966_v24 }
  0x5d   :  { %1290 = vmatprep.subr.bf16.mxu1 %v1289_v6  ;;  %1386 = vmatprep.subr.bf16.mxu0 %v1385_v9 }
  0x60   :  { %1292 = vmatpush3.bf16.msra.mxu1 %v1289_v6  ;;  %1388 = vmatpush3.bf16.msra.mxu0 %v1385_v9 }
  0x61   :  { %1294 = vmatprep.subr.bf16.mxu1 %v1293_v33  ;;  %1390 = vmatprep.subr.bf16.mxu0 %v1389_v15 }
  0x64   :  { %1296 = vmatpush3.bf16.msra.mxu1 %v1293_v33  ;;  %1392 = vmatpush3.bf16.msra.mxu0 %v1389_v15 }
  0x65   :  { %1298 = vmatprep.subr.bf16.mxu1 %v1297_v17  ;;  %1394 = vmatprep.subr.bf16.mxu0 %v1393_v19 }
  0x68   :  { %1300 = vmatpush3.bf16.msra.mxu1 %v1297_v17  ;;  %1396 = vmatpush3.bf16.msra.mxu0 %v1393_v19 }
  0x69   :  { %1302 = vmatprep.subr.bf16.mxu1 %v1301_v34  ;;  %1398 = vmatprep.subr.bf16.mxu0 %v1397_v37 }
  0x6c   :  { %1304 = vmatpush3.bf16.msra.mxu1 %v1301_v34  ;;  %1400 = vmatpush3.bf16.msra.mxu0 %v1397_v37 }
  0x6d   :  { %1306 = vmatprep.subr.bf16.mxu1 %v1305_v45  ;;  %1402 = vmatprep.subr.msk.bf16.mxu0 %vm2164_vm12, %v1511_v14 }
  0x6f   :  { %1084 = vmatmul.mubr.f32.vlgmr.msra.gmra.mrb[0].mxu1 %v1777_v55  ;;  %1198 = vmatmul.mubr.f32.vlgmr.msra.gmra.mrb[0].mxu0 %v1777_v55 }
  0x70   :  { %1308 = vmatpush3.bf16.msra.mxu1 %v1305_v45  ;;  %1404 = vmatpush3.bf16.msk.msra.mxu0 %vm2164_vm12, %v1511_v14 }
  0x71   :  { %1310 = vmatprep.subr.bf16.mxu1 %v1309_v57  ;;  %1406 = vmatprep.subr.msk.bf16.mxu0 %vm2165_vm0, %v1511_v14 }
  0x72   :  { %1086 = vmatprep.mubr.f32.mxu1 %v1961_v4  ;;  %1200 = vmatprep.mubr.f32.mxu0 %v1961_v4 }
  0x73   :  { %1087 = vmatmul.mubr.f32.gmra.mrb[2].mxu1 %v1982_v35  ;;  %1201 = vmatmul.mubr.f32.gmra.mrb[2].mxu0 %v1982_v35 }
  0x74   :  { %1312 = vmatpush3.bf16.msra.mxu1 %v1309_v57  ;;  %1408 = vmatpush3.bf16.msk.msra.mxu0 %vm2165_vm0, %v1511_v14 }
  0x75   :  { %1314 = vmatprep.subr.bf16.mxu1 %v1313_v38  ;;  %1410 = vmatprep.subr.msk.bf16.mxu0 %vm2166_vm11, %v1511_v14 }
  0x76   :  { %1121 = vmatprep.mubr.f32.mxu1 %v1762_v50  ;;  %1235 = vmatprep.mubr.f32.mxu0 %v1725_v43 }
  0x78   :  { %1316 = vmatpush3.bf16.msra.mxu1 %v1313_v38  ;;  %1412 = vmatpush3.bf16.msk.msra.mxu0 %vm2166_vm11, %v1511_v14 }
  0x79   :  { %1318 = vmatprep.subr.bf16.mxu1 %v1317_v12  ;;  %1414 = vmatprep.subr.msk.bf16.mxu0 %vm2167_vm8, %v1511_v14 }
  0x7c   :  { %1320 = vmatpush3.bf16.msra.mxu1 %v1317_v12  ;;  %1416 = vmatpush3.bf16.msk.msra.mxu0 %vm2167_vm8, %v1511_v14 }
  0x7d   :  { %1322 = vmatprep.subr.bf16.mxu1 %v1321_v18  ;;  %1418 = vmatprep.subr.msk.bf16.mxu0 %vm1755_vm5, %v1511_v14 }
  0x80   :  { %1324 = vmatpush3.bf16.msra.mxu1 %v1321_v18  ;;  %1420 = vmatpush3.bf16.msk.msra.mxu0 %vm1755_vm5, %v1511_v14  ;;  %vm826_vm5 = vcmask 31744  }
  0x81   :  { %1326 = vmatprep.subr.bf16.mxu1 %v1325_v29  ;;  %1422 = vmatprep.subr.msk.bf16.mxu0 %vm1806_vm15, %v1511_v14 }
  0x84   :  { %1328 = vmatpush3.bf16.msra.mxu1 %v1325_v29  ;;  %1424 = vmatpush3.bf16.msk.msra.mxu0 %vm1806_vm15, %v1511_v14 }
  0x85   :  { %1330 = vmatprep.subr.bf16.mxu1 %v1329_v39  ;;  %1426 = vmatprep.subr.msk.bf16.mxu0 %vm1857_vm3, %v1511_v14 }
  0x88   :  { %1332 = vmatpush3.bf16.msra.mxu1 %v1329_v39  ;;  %1428 = vmatpush3.bf16.msk.msra.mxu0 %vm1857_vm3, %v1511_v14 }
  0x89   :  { %1334 = vmatprep.subr.bf16.mxu1 %v1333_v40  ;;  %1430 = vmatprep.subr.msk.bf16.mxu0 %vm1911_vm10, %v1511_v14 }
  0x8c   :  { %1336 = vmatpush3.bf16.msra.mxu1 %v1333_v40  ;;  %1432 = vmatpush3.bf16.msk.msra.mxu0 %vm1911_vm10, %v1511_v14 }
  0x8f   :  { %1122 = vmatmul.mubr.f32.vlgmr.msra.gmra.mrb[0].mxu1 %v1833_v3  ;;  %1236 = vmatmul.mubr.f32.vlgmr.msra.gmra.mrb[0].mxu0 %v1777_v55 }
  0x90   :  { %1124 = vmatprep.mubr.f32.mxu1 %v1974_v28  ;;  %1238 = vmatprep.mubr.f32.mxu0 %v1961_v4 }
  0x93   :  { %1125 = vmatmul.mubr.f32.gmra.mrb[2].mxu1 %v1989_v20  ;;  %1239 = vmatmul.mubr.f32.gmra.mrb[2].mxu0 %v1982_v35 }
 0x162   :  { %v1123_v43 = vpop.f32.mrb[0].mxu1  ;;  %v1237_v46 = vpop.f32.mrb[0].mxu0 }
 0x163   :  { %v1433_v49 = vadd.f32 %v1237_v46, %v1123_v43  ;;  %v478_v50 = vpop.f32.mrb[1].mxu1  ;;  %v788_v56 = vpop.f32.mrb[1].mxu0 }
 0x164   :  { %v1434_v59 = vadd.f32 %v788_v56, %v478_v50 }
 0x165   :  { %v886_v62 = vadd.f32 -0.2, %v1433_v49 }
 0x166   :  { %v885_v14 = vadd.f32 -0.2, %v1434_v59  ;;  %v1126_v63 = vpop.f32.mrb[2].mxu1  ;;  %v1240_v3 = vpop.f32.mrb[2].mxu0 }
 0x167   :  { %v890_v10 = vclamps-f32 %v886_v62, 1.0  ;;  %v1435_v55 = vadd.f32 %v1240_v3, %v1126_v63  ;;  %v492_v21 = vpop.f32.mrb[3].mxu1  ;;  %v800_v23 = vpop.f32.mrb[3].mxu0 }
 0x168   :  { %v889_v30 = vclamps-f32 %v885_v14, 1.0  ;;  %v1436_v41 = vadd.f32 %v800_v23, %v492_v21 }
 0x169   :  { %v823_v47 = vmul.f32 8.0, %v890_v10  ;;  %v888_v53 = vadd.f32 -0.2, %v1435_v55 }
 0x16a   :  { %v822_v54 = vmul.f32 8.0, %v889_v30  ;;  %v887_v4 = vadd.f32 -0.2, %v1436_v41 }
 0x16b   :  { %828 = vst.msk [vmem:[%s2102_s2 + $0x8] sm:$0xff] %vm826_vm5, %v823_v47  ;;  %v892_v24 = vclamps-f32 %v888_v53, 1.0 }
 0x16c   :  { %827 = vst.msk [vmem:[%s2102_s2] sm:$0xff] %vm826_vm5, %v822_v54  ;;  %v891_v25 = vclamps-f32 %v887_v4, 1.0 }
 0x16d   :  { %v825_v28 = vmul.f32 8.0, %v892_v24 }
 0x16e   :  { %v824_v35 = vmul.f32 8.0, %v891_v25 }
 0x16f   :  { %830 = vst.msk [vmem:[%s2102_s2 + $0x18] sm:$0xff] %vm826_vm5, %v825_v28 }
 0x170   :  { %829 = vst.msk [vmem:[%s2102_s2 + $0x10] sm:$0xff] %vm826_vm5, %v824_v35 }
 0x171   :  { %835 = vsyncpa [#allocation3], 1 }
 0x172   :  { %836 = vsyncpa [#allocation5], 1 }

</bundles_post_ra>
